<compile_context>
chip_gen: v6e
topology: v6e:2x2x1
jax: 0.10.0
libtpu: 0.0.40
codegen_flags: <defaults>
</compile_context>

<pallas_src>
import numpy as np
import jax
import jax.numpy as jnp
from jax.experimental import pallas as pl
from jax.experimental.pallas import tpu as pltpu

# ----- small configuration, consistent with the module's constructor arguments -----
FILTER_LENGTH = 64                         # filter_length (scaled-down demo size)
N_OVERLAP     = 4                          # n_overlap
HOP           = FILTER_LENGTH // N_OVERLAP # hop_length = filter_length / n_overlap
WIN_LENGTH    = FILTER_LENGTH              # win_length == filter_length
CUTOFF        = FILTER_LENGTH // 2 + 1     # number of real/imag frequency bins
LANES         = 128                        # packed spectral lane width (re | pad | im | pad)
HALF          = LANES // 2                 # lane offset of the imaginary half
assert CUTOFF <= HALF, "packed-lane layout requires cutoff <= 64"


# ---------------------------------------------------------------------------
# Parameter setup (same construction as the torch STFT module, float64 -> f32)
# ---------------------------------------------------------------------------
def _make_stft_bases():
    fourier = np.fft.fft(np.eye(FILTER_LENGTH))
    fb = np.vstack([np.real(fourier[:CUTOFF]), np.imag(fourier[:CUTOFF])])  # (2C, FL)
    n = np.arange(WIN_LENGTH)
    win = 0.5 - 0.5 * np.cos(2.0 * np.pi * n / WIN_LENGTH)  # periodic hann (fftbins=True)
    forward = (fb * win[None, :]).astype(np.float32)        # (2C, FL)
    scale = FILTER_LENGTH / HOP
    inverse = (np.linalg.pinv(scale * fb).T * win[None, :]).astype(np.float32)  # (2C, FL)
    return forward, inverse, win.astype(np.float32)


_FORWARD, _INVERSE, _WIN = _make_stft_bases()


def _make_packed_consts():
    """Single packed constant (FL + 128 + 1, 128):
       rows [0, FL)             : forward basis, chunked per hop-row, re|im lane halves
       rows [FL, FL + 128)      : pinv inverse basis (re rows 0:C, im rows 64:64+C)
       row  FL + 128            : real-lane mask (1.0 on lanes [0, CUTOFF), else 0)"""
    fwd = np.zeros((FILTER_LENGTH, LANES), np.float32)
    fwd[:, :CUTOFF] = _FORWARD[:CUTOFF].T
    fwd[:, HALF:HALF + CUTOFF] = _FORWARD[CUTOFF:].T
    inv = np.zeros((LANES, LANES), np.float32)
    inv[:CUTOFF, :FILTER_LENGTH] = _INVERSE[:CUTOFF]
    inv[HALF:HALF + CUTOFF, :FILTER_LENGTH] = _INVERSE[CUTOFF:]
    mask = np.zeros((1, LANES), np.float32)
    mask[0, :CUTOFF] = 1.0
    return np.concatenate([fwd, inv, mask], axis=0)          # (FL + 128 + 1, 128)


_CONSTS = _make_packed_consts()
_INV_ROW0 = FILTER_LENGTH
_MASK_ROW = FILTER_LENGTH + LANES
_CONST_ROWS = _CONSTS.shape[0]


def _inv_window_scale(n_frames):
    """Combined window_sumsquare normalization + (filter_length / hop) scale."""
    win_sq = (_WIN.astype(np.float64)) ** 2
    out_len = FILTER_LENGTH + HOP * (n_frames - 1)
    wss = np.zeros(out_len, np.float64)
    for i in range(n_frames):
        wss[i * HOP:i * HOP + FILTER_LENGTH] += win_sq
    tiny = np.finfo(np.float32).tiny
    scale = FILTER_LENGTH / HOP
    return np.where(wss > tiny, scale / wss, scale).astype(np.float32)


# ---------------------------------------------------------------------------
# Pallas kernel: forward STFT, denoise, inverse STFT (per batch element)
# ---------------------------------------------------------------------------
def _bias_remove_kernel(strength_ref, rows_ref, bias_ref, consts_ref, invwin_ref,
                        out_ref, acc_ref):
    strength = strength_ref[0]
    rows = rows_ref[0]                                       # (n_rows, HOP) hop-sliced audio
    n_frames = rows.shape[0] - (N_OVERLAP - 1)

    # forward STFT: frame f = hop-rows [f, f + N_OVERLAP); fused re|im basis,
    # default (single-pass) MXU precision, f32 accumulation.
    spec = jnp.dot(rows[0:n_frames], consts_ref[0:HOP, :],
                   preferred_element_type=jnp.float32)       # (n_frames, 128)
    for j in range(1, N_OVERLAP):
        spec = spec + jnp.dot(rows[j:j + n_frames],
                              consts_ref[j * HOP:(j + 1) * HOP, :],
                              preferred_element_type=jnp.float32)

    # denoise: re at lane c, im at lane c+HALF -> pair them with a lane roll (XLU).
    sq = spec * spec
    mag = jnp.sqrt(sq + pltpu.roll(sq, shift=HALF, axis=1))  # |spec| on both lane halves
    nz = mag > 0.0
    safe = jnp.where(nz, mag, 1.0)
    den = jnp.maximum(mag - bias_ref[...] * strength, 0.0)   # clamp(spec - bias*strength, 0)
    ratio = den * pl.reciprocal(safe, approx=True)           # EUP, off the VALU slots
    re_lane = consts_ref[_MASK_ROW:_MASK_ROW + 1, :]         # atan2(0,0)=0 -> cos=1 on re lanes
    new_spec = jnp.where(nz, spec * ratio, den * re_lane)

    # inverse STFT: one matmul -> per-frame 64-sample contribution, then
    # overlap-add of the N_OVERLAP hop-chunks into the VMEM scratch.
    contrib = jnp.dot(new_spec, consts_ref[_INV_ROW0:_INV_ROW0 + LANES, :],
                      preferred_element_type=jnp.float32)    # (n_frames, 128); lanes >= FL are 0
    acc_ref[0:n_frames, :] = contrib[:, 0:HOP]               # j = 0: plain store, no RMW
    acc_ref[n_frames:n_frames + (N_OVERLAP - 1), :] = jnp.zeros(
        (N_OVERLAP - 1, HOP), jnp.float32)                   # tail chunks start at zero
    for j in range(1, N_OVERLAP):
        acc_ref[j:j + n_frames, :] += contrib[:, j * HOP:(j + 1) * HOP]

    # window_sumsquare correction + filter_length/hop scaling (elementwise)
    out_ref[0] = acc_ref[...] * invwin_ref[...]


# ---------------------------------------------------------------------------
# Wrapper (reflect padding / hop-row view / constant plumbing in plain JAX)
# ---------------------------------------------------------------------------
def hifigan_bias_remover(audio, bias_spec, strength=0.1):
    audio = audio.astype(jnp.float32)
    B, T = audio.shape
    # TODO(synk): support T not divisible by hop_length (pad rows + crop) like torch STFT.
    assert T % HOP == 0, "demo wrapper assumes audio length divisible by hop_length"
    pad = FILTER_LENGTH // 2

    # reflect padding (as in STFT.transform) + contiguous hop-row view (no gather)
    padded = jnp.pad(audio, ((0, 0), (pad, pad)), mode="reflect")
    n_frames = (padded.shape[1] - FILTER_LENGTH) // HOP + 1
    n_rows = n_frames + N_OVERLAP - 1                        # hop rows the frames consume
    n_chunks = n_rows                                        # overlap-add output rows
    rows = padded[:, :n_rows * HOP].reshape(B, n_rows, HOP)

    bias_vec = bias_spec[0, :, 0].astype(jnp.float32)
    bias_packed = jnp.zeros((1, LANES), jnp.float32)
    bias_packed = bias_packed.at[0, :CUTOFF].set(bias_vec)
    bias_packed = bias_packed.at[0, HALF:HALF + CUTOFF].set(bias_vec)

    consts = jnp.asarray(_CONSTS)
    invwin = jnp.asarray(_inv_window_scale(n_frames).reshape(n_chunks, HOP))
    strength_arr = jnp.asarray([strength], jnp.float32)

    # TODO(synk): for very long audio, add a frame-tile grid axis (with an OLA carry in
    # scratch) so per-step blocks stay small for v7x's 64 MiB VMEM and the second
    # TensorCore gets work when B == 1.
    out = pl.pallas_call(
        _bias_remove_kernel,
        out_shape=jax.ShapeDtypeStruct((B, n_chunks, HOP), jnp.float32),
        grid_spec=pltpu.PrefetchScalarGridSpec(
            num_scalar_prefetch=0,
            grid=(B,),
            in_specs=[
                pl.BlockSpec(memory_space=pltpu.MemorySpace.SMEM),      # strength
                pl.BlockSpec((1, n_rows, HOP), lambda b: (b, 0, 0)),    # hop rows
                pl.BlockSpec((1, LANES), lambda b: (0, 0)),             # packed bias
                pl.BlockSpec((_CONST_ROWS, LANES), lambda b: (0, 0)),   # packed bases + mask
                pl.BlockSpec((n_chunks, HOP), lambda b: (0, 0)),        # invwin scale
            ],
            out_specs=pl.BlockSpec((1, n_chunks, HOP), lambda b: (b, 0, 0)),
            scratch_shapes=[pltpu.VMEM((n_chunks, HOP), jnp.float32)],
        ),
        compiler_params=pltpu.CompilerParams(dimension_semantics=("parallel",)),
    )(strength_arr, rows, bias_packed, consts, invwin)

    full = out.reshape(B, n_chunks * HOP)                    # (B, (n_frames-1)*hop + FL)
    audio_denoised = full[:, pad:full.shape[1] - pad]        # torch inverse crops FL/2 both sides
    return audio_denoised[:, None, :]                        # (B, 1, T) as in torch


# ---------------------------------------------------------------------------
# Pure-numpy reference (same math, atan2/cos/sin form) for validation
# ---------------------------------------------------------------------------
def _reference(audio, bias_spec, strength):
    audio = audio.astype(np.float64)
    fwd = _FORWARD.astype(np.float64)
    inv = _INVERSE.astype(np.float64)
    B, T = audio.shape
    pad = FILTER_LENGTH // 2
    padded = np.pad(audio, ((0, 0), (pad, pad)), mode="reflect")
    n_frames = (padded.shape[1] - FILTER_LENGTH) // HOP + 1
    idx = HOP * np.arange(n_frames)[:, None] + np.arange(FILTER_LENGTH)[None, :]
    frames = padded[:, idx]
    spec = frames @ fwd.T
    re, im = spec[..., :CUTOFF], spec[..., CUTOFF:]
    mag = np.sqrt(re * re + im * im)
    phase = np.arctan2(im, re)
    bias = bias_spec[0, :, 0].astype(np.float64)
    den = np.maximum(mag - bias[None, None, :] * strength, 0.0)
    rec = np.concatenate([den * np.cos(phase), den * np.sin(phase)], axis=-1)
    contrib = rec @ inv
    out_len = FILTER_LENGTH + HOP * (n_frames - 1)
    out = np.zeros((B, out_len))
    for f in range(n_frames):
        out[:, f * HOP:f * HOP + FILTER_LENGTH] += contrib[:, f]
    out *= _inv_window_scale(n_frames).astype(np.float64)[None, :]
    return out[:, pad:-pad][:, None, :]


if __name__ == "__main__":
    key = jax.random.PRNGKey(0)
    k_bias, k_audio = jax.random.split(key)

    # TODO(synk): the real module derives bias_spec from STFT(model(zeros_mel)); no
    # hifigan generator is available here, so a deterministic synthetic non-negative
    # magnitude spectrum stands in for it.
    bias_spec = jnp.abs(jax.random.normal(k_bias, (1, CUTOFF, 1), dtype=jnp.float32))
    audio = jax.random.normal(k_audio, (2, 256), dtype=jnp.float32)

    out = hifigan_bias_remover(audio, bias_spec, strength=0.1)
    out = jax.block_until_ready(out)

    assert out.shape == (2, 1, 256), out.shape
    ref = _reference(np.asarray(audio), np.asarray(bias_spec), 0.1)
    np.testing.assert_allclose(np.asarray(out), ref, rtol=2e-2, atol=2e-2)
    print("KERNEL_OK")
</pallas_src>

<mosaic_0001>
module attributes {stable_mosaic.version = 11 : i64} {
  func.func @_bias_remove_kernel(%arg0: i32, %arg1: memref<1xf32, #tpu.memory_space<smem>>, %arg2: memref<1x20x16xf32, #tpu.memory_space<vmem>>, %arg3: memref<1x128xf32, #tpu.memory_space<vmem>>, %arg4: memref<193x128xf32, #tpu.memory_space<vmem>>, %arg5: memref<20x16xf32, #tpu.memory_space<vmem>>, %arg6: memref<1x20x16xf32, #tpu.memory_space<vmem>>, %arg7: memref<20x16xf32, #tpu.memory_space<vmem>>) attributes {dimension_semantics = [#tpu.dimension_semantics<parallel>], iteration_bounds = array<i64: 2>, scalar_prefetch = 0 : i64, scratch_operands = 1 : i64, tpu.core_type = #tpu.core_type<tc>, window_params = [{transform_indices = @transform_0, window_bounds = array<i64: 1>}, {transform_indices = @transform_1, window_bounds = array<i64: 1, 20, 16>}, {pipeline_mode = #tpu.pipeline_mode<synchronous>, transform_indices = @transform_2, window_bounds = array<i64: 1, 128>}, {pipeline_mode = #tpu.pipeline_mode<synchronous>, transform_indices = @transform_3, window_bounds = array<i64: 193, 128>}, {pipeline_mode = #tpu.pipeline_mode<synchronous>, transform_indices = @transform_4, window_bounds = array<i64: 20, 16>}, {transform_indices = @transform_5, window_bounds = array<i64: 1, 20, 16>}]} {
    %c0 = arith.constant 0 : index
    %0 = memref.load %arg1[%c0] : memref<1xf32, #tpu.memory_space<smem>>
    %c0_0 = arith.constant 0 : index
    %c0_1 = arith.constant 0 : index
    %c0_2 = arith.constant 0 : index
    %1 = vector.load %arg2[%c0_0, %c0_1, %c0_2] : memref<1x20x16xf32, #tpu.memory_space<vmem>>, vector<1x20x16xf32>
    %2 = vector.shape_cast %1 : vector<1x20x16xf32> to vector<20x16xf32>
    %3 = vector.extract_strided_slice %2 {offsets = [0, 0], sizes = [17, 16], strides = [1, 1]} : vector<20x16xf32> to vector<17x16xf32>
    %c0_3 = arith.constant 0 : index
    %c0_4 = arith.constant 0 : index
    %4 = vector.load %arg4[%c0_3, %c0_4] : memref<193x128xf32, #tpu.memory_space<vmem>>, vector<16x128xf32>
    %cst = arith.constant dense<0.000000e+00> : vector<17x128xf32>
    %5 = tpu.matmul %3, %4, %cst {dimension_numbers = #tpu.dot_dimension_numbers<[1], [0], [0], [1], [0, 0, 1, 1], [], []>} : vector<17x16xf32>, vector<16x128xf32>, vector<17x128xf32> -> vector<17x128xf32>
    %6 = vector.extract_strided_slice %2 {offsets = [1, 0], sizes = [17, 16], strides = [1, 1]} : vector<20x16xf32> to vector<17x16xf32>
    %c16 = arith.constant 16 : index
    %c0_5 = arith.constant 0 : index
    %7 = vector.load %arg4[%c16, %c0_5] : memref<193x128xf32, #tpu.memory_space<vmem>>, vector<16x128xf32>
    %cst_6 = arith.constant dense<0.000000e+00> : vector<17x128xf32>
    %8 = tpu.matmul %6, %7, %cst_6 {dimension_numbers = #tpu.dot_dimension_numbers<[1], [0], [0], [1], [0, 0, 1, 1], [], []>} : vector<17x16xf32>, vector<16x128xf32>, vector<17x128xf32> -> vector<17x128xf32>
    %9 = arith.addf %5, %8 : vector<17x128xf32>
    %10 = vector.extract_strided_slice %2 {offsets = [2, 0], sizes = [17, 16], strides = [1, 1]} : vector<20x16xf32> to vector<17x16xf32>
    %c32 = arith.constant 32 : index
    %c0_7 = arith.constant 0 : index
    %11 = vector.load %arg4[%c32, %c0_7] : memref<193x128xf32, #tpu.memory_space<vmem>>, vector<16x128xf32>
    %cst_8 = arith.constant dense<0.000000e+00> : vector<17x128xf32>
    %12 = tpu.matmul %10, %11, %cst_8 {dimension_numbers = #tpu.dot_dimension_numbers<[1], [0], [0], [1], [0, 0, 1, 1], [], []>} : vector<17x16xf32>, vector<16x128xf32>, vector<17x128xf32> -> vector<17x128xf32>
    %13 = arith.addf %9, %12 : vector<17x128xf32>
    %14 = vector.extract_strided_slice %2 {offsets = [3, 0], sizes = [17, 16], strides = [1, 1]} : vector<20x16xf32> to vector<17x16xf32>
    %c48 = arith.constant 48 : index
    %c0_9 = arith.constant 0 : index
    %15 = vector.load %arg4[%c48, %c0_9] : memref<193x128xf32, #tpu.memory_space<vmem>>, vector<16x128xf32>
    %cst_10 = arith.constant dense<0.000000e+00> : vector<17x128xf32>
    %16 = tpu.matmul %14, %15, %cst_10 {dimension_numbers = #tpu.dot_dimension_numbers<[1], [0], [0], [1], [0, 0, 1, 1], [], []>} : vector<17x16xf32>, vector<16x128xf32>, vector<17x128xf32> -> vector<17x128xf32>
    %17 = arith.addf %13, %16 : vector<17x128xf32>
    %18 = arith.mulf %17, %17 : vector<17x128xf32>
    %c64_i32 = arith.constant 64 : i32
    %19 = tpu.dynamic_rotate %18 by %c64_i32 dim 1 : vector<17x128xf32>, i32 -> vector<17x128xf32>
    %20 = arith.addf %18, %19 : vector<17x128xf32>
    %21 = math.sqrt %20 : vector<17x128xf32>
    %cst_11 = arith.constant 0.000000e+00 : f32
    %22 = vector.broadcast %cst_11 : f32 to vector<17x128xf32>
    %23 = arith.cmpf ogt, %21, %22 : vector<17x128xf32>
    %cst_12 = arith.constant 1.000000e+00 : f32
    %24 = vector.broadcast %cst_12 : f32 to vector<17x128xf32>
    %25 = arith.select %23, %21, %24 : vector<17x128xi1>, vector<17x128xf32>
    %c0_13 = arith.constant 0 : index
    %c0_14 = arith.constant 0 : index
    %26 = vector.load %arg3[%c0_13, %c0_14] : memref<1x128xf32, #tpu.memory_space<vmem>>, vector<1x128xf32>
    %27 = vector.broadcast %0 : f32 to vector<1x128xf32>
    %28 = arith.mulf %26, %27 : vector<1x128xf32>
    %29 = vector.broadcast %28 : vector<1x128xf32> to vector<17x128xf32>
    %30 = arith.subf %21, %29 : vector<17x128xf32>
    %cst_15 = arith.constant 0.000000e+00 : f32
    %31 = vector.broadcast %cst_15 : f32 to vector<17x128xf32>
    %32 = arith.maximumf %30, %31 : vector<17x128xf32>
    %33 = tpu.reciprocal %25 {approx = true} : vector<17x128xf32> -> vector<17x128xf32>
    %34 = arith.mulf %32, %33 : vector<17x128xf32>
    %c192 = arith.constant 192 : index
    %c0_16 = arith.constant 0 : index
    %35 = vector.load %arg4[%c192, %c0_16] : memref<193x128xf32, #tpu.memory_space<vmem>>, vector<1x128xf32>
    %36 = arith.mulf %17, %34 : vector<17x128xf32>
    %37 = vector.broadcast %35 : vector<1x128xf32> to vector<17x128xf32>
    %38 = arith.mulf %32, %37 : vector<17x128xf32>
    %39 = arith.select %23, %36, %38 : vector<17x128xi1>, vector<17x128xf32>
    %c64 = arith.constant 64 : index
    %c0_17 = arith.constant 0 : index
    %40 = vector.load %arg4[%c64, %c0_17] : memref<193x128xf32, #tpu.memory_space<vmem>>, vector<128x128xf32>
    %cst_18 = arith.constant dense<0.000000e+00> : vector<17x128xf32>
    %41 = tpu.matmul %39, %40, %cst_18 {dimension_numbers = #tpu.dot_dimension_numbers<[1], [0], [0], [1], [0, 0, 1, 1], [], []>} : vector<17x128xf32>, vector<128x128xf32>, vector<17x128xf32> -> vector<17x128xf32>
    %42 = vector.extract_strided_slice %41 {offsets = [0, 0], sizes = [17, 16], strides = [1, 1]} : vector<17x128xf32> to vector<17x16xf32>
    %c0_19 = arith.constant 0 : index
    %c0_20 = arith.constant 0 : index
    %43 = vector.load %arg7[%c0_19, %c0_20] : memref<20x16xf32, #tpu.memory_space<vmem>>, vector<17x16xf32>
    tpu.vector_store %arg7[%c0_19, %c0_20], %42 {strides = array<i32>} : memref<20x16xf32, #tpu.memory_space<vmem>>, vector<17x16xf32>,
    %cst_21 = arith.constant 0.000000e+00 : f32
    %44 = vector.broadcast %cst_21 : f32 to vector<3x16xf32>
    %c17 = arith.constant 17 : index
    %c0_22 = arith.constant 0 : index
    %45 = vector.load %arg7[%c17, %c0_22] : memref<20x16xf32, #tpu.memory_space<vmem>>, vector<3x16xf32>
    tpu.vector_store %arg7[%c17, %c0_22], %44 {strides = array<i32>} : memref<20x16xf32, #tpu.memory_space<vmem>>, vector<3x16xf32>,
    %c1 = arith.constant 1 : index
    %c0_23 = arith.constant 0 : index
    %46 = vector.load %arg7[%c1, %c0_23] : memref<20x16xf32, #tpu.memory_space<vmem>>, vector<17x16xf32>
    %47 = vector.extract_strided_slice %41 {offsets = [0, 16], sizes = [17, 16], strides = [1, 1]} : vector<17x128xf32> to vector<17x16xf32>
    %48 = arith.addf %46, %47 : vector<17x16xf32>
    %c1_24 = arith.constant 1 : index
    %c0_25 = arith.constant 0 : index
    %49 = vector.load %arg7[%c1_24, %c0_25] : memref<20x16xf32, #tpu.memory_space<vmem>>, vector<17x16xf32>
    tpu.vector_store %arg7[%c1_24, %c0_25], %48 {strides = array<i32>} : memref<20x16xf32, #tpu.memory_space<vmem>>, vector<17x16xf32>,
    %c2 = arith.constant 2 : index
    %c0_26 = arith.constant 0 : index
    %50 = vector.load %arg7[%c2, %c0_26] : memref<20x16xf32, #tpu.memory_space<vmem>>, vector<17x16xf32>
    %51 = vector.extract_strided_slice %41 {offsets = [0, 32], sizes = [17, 16], strides = [1, 1]} : vector<17x128xf32> to vector<17x16xf32>
    %52 = arith.addf %50, %51 : vector<17x16xf32>
    %c2_27 = arith.constant 2 : index
    %c0_28 = arith.constant 0 : index
    %53 = vector.load %arg7[%c2_27, %c0_28] : memref<20x16xf32, #tpu.memory_space<vmem>>, vector<17x16xf32>
    tpu.vector_store %arg7[%c2_27, %c0_28], %52 {strides = array<i32>} : memref<20x16xf32, #tpu.memory_space<vmem>>, vector<17x16xf32>,
    %c3 = arith.constant 3 : index
    %c0_29 = arith.constant 0 : index
    %54 = vector.load %arg7[%c3, %c0_29] : memref<20x16xf32, #tpu.memory_space<vmem>>, vector<17x16xf32>
    %55 = vector.extract_strided_slice %41 {offsets = [0, 48], sizes = [17, 16], strides = [1, 1]} : vector<17x128xf32> to vector<17x16xf32>
    %56 = arith.addf %54, %55 : vector<17x16xf32>
    %c3_30 = arith.constant 3 : index
    %c0_31 = arith.constant 0 : index
    %57 = vector.load %arg7[%c3_30, %c0_31] : memref<20x16xf32, #tpu.memory_space<vmem>>, vector<17x16xf32>
    tpu.vector_store %arg7[%c3_30, %c0_31], %56 {strides = array<i32>} : memref<20x16xf32, #tpu.memory_space<vmem>>, vector<17x16xf32>,
    %c0_32 = arith.constant 0 : index
    %c0_33 = arith.constant 0 : index
    %58 = vector.load %arg7[%c0_32, %c0_33] : memref<20x16xf32, #tpu.memory_space<vmem>>, vector<20x16xf32>
    %c0_34 = arith.constant 0 : index
    %c0_35 = arith.constant 0 : index
    %59 = vector.load %arg5[%c0_34, %c0_35] : memref<20x16xf32, #tpu.memory_space<vmem>>, vector<20x16xf32>
    %60 = arith.mulf %58, %59 : vector<20x16xf32>
    %c0_36 = arith.constant 0 : index
    %c0_37 = arith.constant 0 : index
    %c0_38 = arith.constant 0 : index
    %61 = vector.load %arg6[%c0_36, %c0_37, %c0_38] : memref<1x20x16xf32, #tpu.memory_space<vmem>>, vector<1x20x16xf32>
    %62 = vector.shape_cast %61 : vector<1x20x16xf32> to vector<20x16xf32>
    %63 = vector.shape_cast %60 : vector<20x16xf32> to vector<1x20x16xf32>
    tpu.vector_store %arg6[%c0_36, %c0_37, %c0_38], %63 {strides = array<i32>} : memref<1x20x16xf32, #tpu.memory_space<vmem>>, vector<1x20x16xf32>,
    return
  }
  func.func @transform_0(%arg0: i32) -> i32 {
    %c0_i32 = arith.constant 0 : i32
    %c0_i32_0 = arith.constant 0 : i32
    return %c0_i32 : i32
  }
  func.func @transform_1(%arg0: i32) -> (i32, i32, i32) {
    %c0_i32 = arith.constant 0 : i32
    %c0_i32_0 = arith.constant 0 : i32
    %c0_i32_1 = arith.constant 0 : i32
    return %arg0, %c0_i32, %c0_i32_0 : i32, i32, i32
  }
  func.func @transform_2(%arg0: i32) -> (i32, i32) {
    %c0_i32 = arith.constant 0 : i32
    %c0_i32_0 = arith.constant 0 : i32
    %c0_i32_1 = arith.constant 0 : i32
    return %c0_i32, %c0_i32_0 : i32, i32
  }
  func.func @transform_3(%arg0: i32) -> (i32, i32) {
    %c0_i32 = arith.constant 0 : i32
    %c0_i32_0 = arith.constant 0 : i32
    %c0_i32_1 = arith.constant 0 : i32
    return %c0_i32, %c0_i32_0 : i32, i32
  }
  func.func @transform_4(%arg0: i32) -> (i32, i32) {
    %c0_i32 = arith.constant 0 : i32
    %c0_i32_0 = arith.constant 0 : i32
    %c0_i32_1 = arith.constant 0 : i32
    return %c0_i32, %c0_i32_0 : i32, i32
  }
  func.func @transform_5(%arg0: i32) -> (i32, i32, i32) {
    %c0_i32 = arith.constant 0 : i32
    %c0_i32_0 = arith.constant 0 : i32
    %c0_i32_1 = arith.constant 0 : i32
    return %arg0, %c0_i32, %c0_i32_0 : i32, i32, i32
  }
}

</mosaic_0001>

<bundles_post_ra>
// kernel: tpu_custom_call.1
= control target key start
LH: loop header
LB: loop body
LE: loop exit
PB: predicated region body
PF: predicated region fallthrough
CT: control target
= control target key end

     0   :  { %s1378_s0 = inlined_call_operand.<no memory space> [shape: f32[1], index: 0, kind: input, shape index: {}]   ;;  %s1379_s1 = inlined_call_operand.vmem [shape: f32[2,20,16], index: 1, kind: input, shape index: {}]   ;;  %s1380_s2 = inlined_call_operand.vmem [shape: f32[1,128], index: 2, kind: input, shape index: {}]   ;;  %s1381_s3 = inlined_call_operand.hbm [shape: f32[193,128], index: 3, kind: input, shape index: {}]   ;;  %s1382_s4 = inlined_call_operand.vmem [shape: f32[20,16], index: 4, kind: input, shape index: {}]   ;;  %s1383_s5 = inlined_call_operand.vmem [shape: f32[2,20,16], index: 5, kind: output, shape index: {}]  }
   0x1   :  { %10 = sst [smem:[#allocation3]] %s1378_s0 }
   0x2   :  { %11 = vsyncpa [#allocation5], 0  ;;  %s1214_s20 = smov 0  }
   0x3 LB: > { %s1220_s21 = sadd.s32 4294967295, %s1170_s20   ;;  %p940_p0 = scmp.ge.s32.totalorder %s1170_s20, 1  ;;  %s1170_s20 = sphi %s1214_s20, %s17_s20  }
   0x4   : > { %p158_p1 = scmp.lt.s32.totalorder %s1170_s20, 3  ;;  %s1172_s22 = smov [#allocation4]  }
   0x5   : > { %s176_s23 = sshll.u32 %s1172_s22, 4  ;;  %p1103_p3 = scmp.eq.s32.totalorder %s1220_s21, 0  ;;  %s177_s23 = int_to_ptr.vmem [resolvable:$true] %s176_s23 }
   0x6   : > { %p1224_p2 = pnand %p940_p0, %p158_p1  ;;  %s1145_s24 = scalar_lea.vmem %s177_s23, 3200 }
   0x7   : > { %p1146_p7 = scmp.ne.s32.totalorder %s177_s23, %s1145_s24  ;;  %p1153_p10 = scmp.lt.s32.totalorder %s177_s23, %s177_s23 }
   0x8   : > { %p1099_p4 = pneg %p1224_p2  ;;  %p1154_p11 = scmp.lt.s32.totalorder %s1145_s24, %s1145_s24 }
   0xa   : > { %p1100_p5 = pnand %p1103_p3, %p1099_p4  ;;  %p1155_p12 = por %p1154_p11, %p1153_p10 }
   0xc   : > { %p1136_p6 = pneg %p1100_p5 }
   0xe   : > { %p1148_p8 = pnand %p1146_p7, %p1136_p6 }
  0x10   : > { %p1149_p9 = pneg %p1148_p8 }
  0x12   : > { %p1156_p13 = pnand %p1155_p12, %p1149_p9 }
  0x14   : > { %1159 = shalt.err (!%p1156_p13)
}
  0x15   : > { %s1173_s25 = smov 128   ;;  %s1174_s26 = smov 8  }
  0x16   : > { %1102 = dma.hbm_to_vmem [thread:$0]  (!%p1100_p5), %s1381_s3, 3200, %s177_s23, [#allocation5], %s1173_s25, %s1173_s25, %s1174_s26  }
  0x17   : > { %203 = sbr.rel (%p1224_p2) target bundleno = 766 (0x2fe), region = 40 }
  0x1c   : > { %1165 = dma.done.wait (%p1103_p3), [#allocation5], 3200  }
  0x1d   : > { %1167 = vsyncadd (%p1103_p3), [#allocation5], 4294964096  ;;  %p231_p0 = scmp.lt.s32.totalorder %s1220_s21, 1  ;;  %v1175_v0 = vmov 0.0   ;;  %vm1176_vm0 = vmmov 0   ;;  %v248_v1 = vld [vmem:[#allocation4 + $0x18] sm:$0xff] }
  0x1e   : > { %1001 = vmatprep.subr.mxu1 %v1175_v0  ;;  %1005 = vmatprep.mubr.msk.f32.mxu1 %vm1176_vm0, %v1175_v0  ;;  %v247_v2 = vld [vmem:[#allocation4 + $0x10] sm:$0xff]  ;;  %vm252_vm1 = vcmask 1046528   ;;  %vm433_vm2 = vcmask 1045504   ;;  %vm258_vm3 = vcmask 130048   ;;  %v432_v10 = vld [vmem:[#allocation4 + $0x28] sm:$0xff]  ;;  %v431_v11 = vld [vmem:[#allocation4 + $0x20] sm:$0xff] }
  0x1f   : > { %s1386_s21 = smov (!%p231_p0, %s1220_s21), 1  ;;  %1027 = vmatprep.subr.mxu0 %v1175_v0  ;;  %1031 = vmatprep.mubr.msk.f32.mxu0 %vm1176_vm0, %v1175_v0  ;;  %v246_v13 = vld [vmem:[#allocation4 + $0x8] sm:$0xff]  ;;  %v245_v17 = vld [vmem:[#allocation4] sm:$0xff]  ;;  %v529_v20 = vld [vmem:[#allocation4 + $0x38] sm:$0xff]  ;;  %vm530_vm4 = vcmask 1044480   ;;  %s1177_s8 = smov 64  }
  0x20   : > { %s1094_s29 = smul.u32 24, %s1386_s21  ;;  %1002 = vmatpush3.msra.mxu1 %v248_v1  ;;  %1028 = vmatpush3.msra.mxu0 %v432_v10  ;;  %v528_v21 = vld [vmem:[#allocation4 + $0x30] sm:$0xff]  ;;  %v714_v50 = vld [vmem:[#allocation4 + $0xb8] sm:$0xff]  ;;  %v712_v56 = vld [vmem:[#allocation4 + $0xa8] sm:$0xff]  ;;  %s241_s9 = sld [smem:[#allocation3]]  ;;  %vm799_vm14 = vcmask 124928  }
  0x21   : > { %1003 = vmatprep.subr.mxu1 %v1175_v0  ;;  %1029 = vmatprep.subr.mxu0 %v1175_v0  ;;  %v713_v52 = vld [vmem:[#allocation4 + $0xb0] sm:$0xff]  ;;  %v711_v59 = vld [vmem:[#allocation4 + $0xa0] sm:$0xff]  ;;  %v710_v63 = vld [vmem:[#allocation4 + $0x98] sm:$0xff]  ;;  %800 = vst.msk [vmem:[#allocation2 + $0x11] sm:$0x7] %vm799_vm14, %v1175_v0  ;;  %s1178_s12 = smov 112  }
  0x22   : > { %s235_s7 = scalar_lea.vmem %s1379_s1, %s1094_s29  ;;  %1004 = vmatpush3.msra.mxu1 %v247_v2  ;;  %1030 = vmatpush3.msra.mxu0 %v431_v11  ;;  %v704_v10 = vld [vmem:[#allocation4 + $0x68] sm:$0xff]  ;;  %v703_v11 = vld [vmem:[#allocation4 + $0x60] sm:$0xff]  ;;  %vm797_vm15 = vcmask 122880   ;;  %s1179_s13 = smov 96  }
  0x23   : > { %v242_v3 = vld [vmem:[%s235_s7] sm:$0xff]  ;;  %v243_v4 = vld [vmem:[%s235_s7 + $0x8] sm:$0xff]  ;;  %v244_v6 = vld [vmem:[%s235_s7 + $0x10] sm:$0xf]  ;;  %1014 = vmatprep.subr.mxu1 %v1175_v0  ;;  %1053 = vmatprep.subr.mxu0 %v1175_v0  ;;  %s1180_s14 = smov 80   ;;  %s240_s24 = scalar_lea.vmem %s1383_s5, %s1094_s29 }
  0x24   : > { %v253_v5 = vrot.slane %v242_v3, 1  ;;  %v434_v7 = vrot.slane %v242_v3, 2  ;;  %v254_v8 = vrot.slane %v243_v4, 1  ;;  %v256_v9 = vrot.slane %v244_v6, 1 }
  0x25   : > { %v435_v12 = vrot.slane %v243_v4, 2  ;;  %v437_v16 = vrot.slane %v244_v6, 2  ;;  %v531_v22 = vrot.slane %v242_v3, 3  ;;  %v532_v23 = vrot.slane %v243_v4, 3 }
  0x26   : > { %v255_v14 = vsel %vm252_vm1, %v253_v5, %v254_v8  ;;  %v257_v18 = vsel %vm252_vm1, %v254_v8, %v256_v9  ;;  %v534_v25 = vrot.slane %v244_v6, 3  ;;  %v706_v8 = vld [vmem:[#allocation4 + $0x78] sm:$0xff] }
  0x27   : > { %v436_v15 = vsel %vm433_vm2, %v434_v7, %v435_v12  ;;  %1006 = vmatmul.mubr.msk.f32.vlgmr.msra.gmra.mxu1 %vm258_vm3, %v255_v14  ;;  %v438_v19 = vsel %vm433_vm2, %v435_v12, %v437_v16  ;;  %v533_v24 = vsel %vm530_vm4, %v531_v22, %v532_v23  ;;  %v707_v7 = vld [vmem:[#allocation4 + $0x80] sm:$0xff]  ;;  %v702_v12 = vld [vmem:[#allocation4 + $0x58] sm:$0xff]  ;;  %v700_v14 = vld [vmem:[#allocation4 + $0x48] sm:$0xff]  ;;  %v668_v22 = vlaneseq }
  0x28   : > { %1015 = vmatpush3.msra.mxu1 %v246_v13  ;;  %1008 = vmatprep.mubr.msk.f32.mxu1 %vm1176_vm0, %v1175_v0  ;;  %v535_v26 = vsel %vm530_vm4, %v532_v23, %v534_v25  ;;  %v701_v13 = vld [vmem:[#allocation4 + $0x50] sm:$0xff] }
  0x29   : > { %1016 = vmatprep.subr.mxu1 %v1175_v0  ;;  %1032 = vmatmul.mubr.msk.f32.vlgmr.msra.gmra.mxu0 %vm258_vm3, %v436_v15  ;;  %v699_v15 = vld [vmem:[#allocation4 + $0x40] sm:$0xff] }
  0x2a   : > { %1017 = vmatpush3.msra.mxu1 %v245_v17  ;;  %1034 = vmatprep.mubr.msk.f32.mxu0 %vm1176_vm0, %v1175_v0 }
  0x2b   : > { %1009 = vmatmul.mubr.msk.f32.gmra.mxu1 %vm258_vm3, %v257_v18  ;;  %1040 = vmatprep.subr.mxu1 %v1175_v0 }
  0x2c   : > { %1011 = vmatprep.mubr.msk.f32.mxu1 %vm1176_vm0, %v1175_v0  ;;  %1054 = vmatpush3.msra.mxu0 %v714_v50 }
  0x2d   : > { %1035 = vmatmul.mubr.msk.f32.gmra.mxu0 %vm258_vm3, %v438_v19  ;;  %1055 = vmatprep.subr.mxu0 %v1175_v0 }
  0x2e   : > { %1037 = vmatprep.mubr.msk.f32.mxu0 %vm1176_vm0, %v1175_v0  ;;  %1056 = vmatpush3.msra.mxu0 %v713_v52  ;;  %v959_v52 = vld [vmem:[#allocation4 + $0xc0] ss:$0 sm:$0xff] }
  0x2f   : > { %1012 = vmatmul.mubr.msk.f32.gmra.mxu1 %vm258_vm3, %v256_v9  ;;  %1057 = vmatprep.subr.mxu0 %v1175_v0  ;;  %v705_v9 = vld [vmem:[#allocation4 + $0x70] sm:$0xff] }
  0x30   : > { %1018 = vmatprep.mubr.msk.f32.mxu1 %vm1176_vm0, %v1175_v0  ;;  %1058 = vmatpush3.msra.mxu0 %v712_v56 }
  0x31   : > { %1038 = vmatmul.mubr.msk.f32.gmra.mxu0 %vm258_vm3, %v437_v16  ;;  %1059 = vmatprep.subr.mxu0 %v1175_v0 }
  0x32   : > { %1085 = vmatprep.mubr.msk.f32.mxu0 %vm1176_vm0, %v1175_v0  ;;  %1060 = vmatpush3.msra.mxu0 %v711_v59 }
  0x33   : > { %1019 = vmatmul.mubr.msk.f32.vlgmr.msra.gmra.mxu1 %vm258_vm3, %v242_v3  ;;  %1061 = vmatprep.subr.mxu0 %v1175_v0  ;;  %v709_v3 = vld [vmem:[#allocation4 + $0x90] sm:$0xff] }
  0x34   : > { %1041 = vmatpush3.msra.mxu1 %v529_v20  ;;  %1021 = vmatprep.mubr.msk.f32.mxu1 %vm1176_vm0, %v1175_v0 }
  0x35   : > { %1042 = vmatprep.subr.mxu1 %v1175_v0  ;;  %1062 = vmatpush3.msra.mxu0 %v710_v63 }
  0x36   : > { %1043 = vmatpush3.msra.mxu1 %v528_v21  ;;  %1063 = vmatprep.subr.mxu0 %v1175_v0 }
  0x37   : > { %1022 = vmatmul.mubr.msk.f32.gmra.mxu1 %vm258_vm3, %v243_v4  ;;  %1064 = vmatpush3.msra.mxu0 %v709_v3 }
  0x38   : > { %1024 = vmatprep.mubr.msk.f32.mxu1 %vm1176_vm0, %v1175_v0  ;;  %1065 = vmatprep.subr.mxu0 %v1175_v0 }
  0x3b   : > { %1025 = vmatmul.mubr.msk.f32.gmra.mxu1 %vm258_vm3, %v244_v6  ;;  %v708_v6 = vld [vmem:[#allocation4 + $0x88] sm:$0xff] }
  0x3c   : > { %1044 = vmatprep.mubr.msk.f32.mxu1 %vm1176_vm0, %v1175_v0  ;;  %1066 = vmatpush3.msra.mxu0 %v708_v6 }
  0x3d   : > { %1067 = vmatprep.subr.mxu0 %v1175_v0 }
  0x3e   : > { %1068 = vmatpush3.msra.mxu0 %v707_v7 }
  0x3f   : > { %1045 = vmatmul.mubr.msk.f32.vlgmr.msra.gmra.mxu1 %vm258_vm3, %v533_v24  ;;  %1069 = vmatprep.subr.mxu0 %v1175_v0 }
  0x40   : > { %1047 = vmatprep.mubr.msk.f32.mxu1 %vm1176_vm0, %v1175_v0  ;;  %1070 = vmatpush3.msra.mxu0 %v706_v8 }
  0x41   : > { %1071 = vmatprep.subr.mxu0 %v1175_v0 }
  0x42   : > { %1072 = vmatpush3.msra.mxu0 %v705_v9 }
  0x43   : > { %1048 = vmatmul.mubr.msk.f32.gmra.mxu1 %vm258_vm3, %v535_v26  ;;  %1073 = vmatprep.subr.mxu0 %v1175_v0 }
  0x44   : > { %1050 = vmatprep.mubr.msk.f32.mxu1 %vm1176_vm0, %v1175_v0  ;;  %1074 = vmatpush3.msra.mxu0 %v704_v10 }
  0x45   : > { %1075 = vmatprep.subr.mxu0 %v1175_v0 }
  0x46   : > { %1076 = vmatpush3.msra.mxu0 %v703_v11 }
  0x47   : > { %1051 = vmatmul.mubr.msk.f32.gmra.mxu1 %vm258_vm3, %v534_v25  ;;  %1077 = vmatprep.subr.mxu0 %v1175_v0 }
  0x48   : > { %1078 = vmatpush3.msra.mxu0 %v702_v12 }
  0x49   : > { %1079 = vmatprep.subr.mxu0 %v1175_v0 }
  0x4a   : > { %1080 = vmatpush3.msra.mxu0 %v701_v13 }
  0x4b   : > { %1081 = vmatprep.subr.mxu0 %v1175_v0 }
  0x4c   : > { %1082 = vmatpush3.msra.mxu0 %v700_v14 }
  0x4d   : > { %1083 = vmatprep.subr.mxu0 %v1175_v0 }
  0x4e   : > { %1084 = vmatpush3.msra.mxu0 %v699_v15 }
  0xe7   : > { %v331_v27 = vpop.f32.mrf.mxu1 }
  0xe9   : > { %v1007_v28 = vpop.f32.mrf.mxu1  ;;  %v511_v29 = vpop.f32.mrf.mxu0 }
  0xea   : > { %v665_v28 = vstv %s241_s9 }
  0xeb   : > { %v336_v30 = vpop.f32.mrf.mxu1  ;;  %v1033_v31 = vpop.f32.mrf.mxu0 }
  0xed   : > { %v1010_v32 = vpop.f32.mrf.mxu1  ;;  %v516_v33 = vpop.f32.mrf.mxu0 }
  0xef   : > { %v341_v34 = vpop.f32.mrf.mxu1  ;;  %v1036_v35 = vpop.f32.mrf.mxu0 }
  0xf1   : > { %v1013_v36 = vpop.f32.mrf.mxu1  ;;  %v521_v37 = vpop.f32.mrf.mxu0 }
  0xf3   : > { %v417_v38 = vpop.f32.mrf.mxu1  ;;  %v1039_v39 = vpop.f32.mrf.mxu0 }
  0xf4   : > { %v418_v43 = vadd.f32 %v417_v38, %v331_v27  ;;  %v664_v27 = vld [vmem:[%s1380_s2] sm:$0x1] }
  0xf5   : > { %v1020_v40 = vpop.f32.mrf.mxu1 }
  0xf6   : > { %v525_v46 = vadd.f32 %v511_v29, %v418_v43  ;;  %v669_v29 = vshrl.u32 %v668_v22, 7 }
  0xf7   : > { %v422_v41 = vpop.f32.mrf.mxu1 }
  0xf8   : > { %v423_v47 = vadd.f32 %v422_v41, %v336_v30  ;;  %v670_v36 = vsub.s32 0, %v669_v29  ;;  %v842_v29 = vld [vmem:[#allocation2 + $0x13] sm:$0x1] }
  0xf9   : > { %v1023_v42 = vpop.f32.mrf.mxu1 }
  0xfa   : > { %v526_v53 = vadd.f32 %v516_v33, %v423_v47 }
  0xfb   : > { %v427_v44 = vpop.f32.mrf.mxu1 }
  0xfc   : > { %v428_v54 = vadd.f32 %v427_v44, %v341_v34  ;;  %v666_v34 = vmul.f32 %v665_v28, %v664_v27 }
  0xfd   : > { %v1026_v45 = vpop.f32.mrf.mxu1 }
  0xfe   : > { %v527_v61 = vadd.f32 %v521_v37, %v428_v54  ;;  %v671_v43 = vrot.slane %v666_v34, %v670_v36 }
  0xff   : > { %v608_v48 = vpop.f32.mrf.mxu1 }
 0x100   : > { %v1303_v49 = vadd.f32 %v608_v48, %v525_v46 }
 0x101   : > { %v1046_v51 = vpop.f32.mrf.mxu1 }
 0x102   : > { %v625_v55 = vmul.f32 %v1303_v49, %v1303_v49 }
 0x103   : > { %v613_v57 = vpop.f32.mrf.mxu1 }
 0x104   : > { %v1308_v58 = vadd.f32 %v613_v57, %v526_v53  ;;  %628 = vrot.lane.b32.xlu0 %v625_v55, %s1177_s8 }
 0x105   : > { %v1049_v60 = vpop.f32.mrf.mxu1 }
 0x106   : > { %v626_v62 = vmul.f32 %v1308_v58, %v1308_v58 }
 0x107   : > { %v618_v1 = vpop.f32.mrf.mxu1 }
 0x108   : > { %v1314_v2 = vadd.f32 %v618_v1, %v527_v61  ;;  %630 = vrot.lane.b32.xlu0 %v626_v62, %s1177_s8 }
 0x109   : > { %v1052_v4 = vpop.f32.mrf.mxu1 }
 0x10a   : > { %v627_v5 = vmul.f32 %v1314_v2, %v1314_v2 }
 0x10c   : > { %632 = vrot.lane.b32.xlu1 %v627_v5, %s1177_s8 }
 0x176   : > { %v629_v16 = vpop.permute.xlu0 %628 }
 0x177   : > { %v634_v17 = vadd.f32 %v629_v16, %v625_v55 }
 0x179   : > { %1122 = vrsqrt.f32 %v634_v17  ;;  %vm639_vm5 = vcmp.eq.f32.partialorder %v634_v17, inf  ;;  %v642_v25 = vand.u32 2147483648, %v634_v17  ;;  %vm641_vm6 = vcmp.eq.f32.partialorder %v634_v17, 0.0 }
 0x17a   : > { %v631_v18 = vpop.permute.xlu0 %630 }
 0x17b   : > { %v635_v19 = vadd.f32 %v631_v18, %v626_v62 }
 0x17d   : > { %1124 = vrsqrt.f32 %v635_v19  ;;  %vm646_vm8 = vcmp.eq.f32.partialorder %v635_v19, inf  ;;  %v649_v35 = vand.u32 2147483648, %v635_v19  ;;  %vm648_vm9 = vcmp.eq.f32.partialorder %v635_v19, 0.0 }
 0x17e   : > { %v633_v20 = vpop.permute.xlu1 %632 }
 0x17f   : > { %v636_v21 = vadd.f32 %v633_v20, %v627_v5 }
 0x181   : > { %1126 = vrsqrt.f32 %v636_v21  ;;  %vm653_vm11 = vcmp.eq.f32.partialorder %v636_v21, inf  ;;  %v656_v42 = vand.u32 2147483648, %v636_v21  ;;  %vm655_vm12 = vcmp.eq.f32.partialorder %v636_v21, 0.0 }
 0x186   : > { %v1123_v23 = vpop.eup %1122 }
 0x187   : > { %v638_v24 = vmul.f32 %v1123_v23, %v634_v17 }
 0x189   : > { %v640_v26 = vsel %vm639_vm5, %v634_v17, %v638_v24  ;;  %v803_v17 = vld [vmem:[#allocation2 + $0x11] sm:$0x1] }
 0x18a   : > { %v1125_v30 = vpop.eup %1124  ;;  %v643_v31 = vsel %vm641_vm6, %v642_v25, %v640_v26 }
 0x18b   : > { %vm658_vm7 = vcmp.gt.f32.partialorder %v643_v31, 0.0  ;;  %v645_v32 = vmul.f32 %v1125_v30, %v635_v19  ;;  %v673_v47 = vsub.f32 %v643_v31, %v671_v43 }
 0x18c   : > { %v661_v33 = vsel %vm658_vm7, %v643_v31, 1.0 }
 0x18d   : > { %1128 = vrcp.f32 %v661_v33  ;;  %v647_v37 = vsel %vm646_vm8, %v635_v19, %v645_v32  ;;  %v676_v48 = vmax.f32 %v673_v47, 0.0 }
 0x18e   : > { %v1127_v38 = vpop.eup %1126  ;;  %v650_v39 = vsel %vm648_vm9, %v649_v35, %v647_v37 }
 0x18f   : > { %vm659_vm10 = vcmp.gt.f32.partialorder %v650_v39, 0.0  ;;  %v652_v40 = vmul.f32 %v1127_v38, %v636_v21  ;;  %v674_v50 = vsub.f32 %v650_v39, %v671_v43  ;;  %v693_v55 = vmul.f32 %v959_v52, %v676_v48  ;;  %v861_v38 = vld [vmem:[%s1382_s4] sm:$0xff] }
 0x190   : > { %v662_v41 = vsel %vm659_vm10, %v650_v39, 1.0  ;;  %v862_v39 = vld [vmem:[%s1382_s4 + $0x8] sm:$0xff] }
 0x191   : > { %1130 = vrcp.f32 %v662_v41  ;;  %v654_v44 = vsel %vm653_vm11, %v636_v21, %v652_v40  ;;  %v677_v56 = vmax.f32 %v674_v50, 0.0  ;;  %v824_v21 = vld [vmem:[#allocation2 + $0x12] sm:$0x1] }
 0x192   : > { %v657_v45 = vsel %vm655_vm12, %v656_v42, %v654_v44  ;;  %v863_v40 = vld [vmem:[%s1382_s4 + $0x10] sm:$0xf] }
 0x193   : > { %vm660_vm13 = vcmp.gt.f32.partialorder %v657_v45, 0.0  ;;  %v675_v57 = vsub.f32 %v657_v45, %v671_v43  ;;  %v694_v63 = vmul.f32 %v959_v52, %v677_v56 }
 0x194   : > { %v663_v46 = vsel %vm660_vm13, %v657_v45, 1.0 }
 0x195   : > { %1132 = vrcp.f32 %v663_v46  ;;  %v678_v1 = vmax.f32 %v675_v57, 0.0 }
 0x197   : > { %v695_v6 = vmul.f32 %v959_v52, %v678_v1 }
 0x19a   : > { %v1129_v51 = vpop.eup %1128 }
 0x19b   : > { %v682_v53 = vmul.f32 %v1129_v51, %v676_v48 }
 0x19d   : > { %v686_v54 = vmul.f32 %v682_v53, %v1303_v49 }
 0x19e   : > { %v1131_v59 = vpop.eup %1130 }
 0x19f   : > { %v696_v60 = vsel %vm658_vm7, %v686_v54, %v693_v55  ;;  %v683_v61 = vmul.f32 %v1131_v59, %v677_v56 }
 0x1a0   : > { %1086 = vmatmul.mubr.f32.vlgmr.msra.gmra.mxu0 %v696_v60 }
 0x1a1   : > { %1088 = vmatprep.mubr.msk.f32.mxu0 %vm1176_vm0, %v1175_v0  ;;  %v687_v62 = vmul.f32 %v683_v61, %v1308_v58 }
 0x1a2   : > { %v1133_v3 = vpop.eup %1132 }
 0x1a3   : > { %v697_v4 = vsel %vm659_vm10, %v687_v62, %v694_v63  ;;  %v684_v5 = vmul.f32 %v1133_v3, %v678_v1 }
 0x1a4   : > { %1089 = vmatmul.mubr.f32.gmra.mxu0 %v697_v4 }
 0x1a5   : > { %1091 = vmatprep.mubr.msk.f32.mxu0 %vm1176_vm0, %v1175_v0  ;;  %v688_v49 = vmul.f32 %v684_v5, %v1314_v2  ;;  %vm869_vm0 = vcmask 125952  }
 0x1a7   : > { %v698_v7 = vsel %vm660_vm13, %v688_v49, %v695_v6 }
 0x1a8   : > { %1092 = vmatmul.mubr.f32.gmra.mxu0 %v698_v7 }
 0x260   : > { %v781_v58 = vpop.f32.mrf.mxu0 }
 0x261   : > { %795 = vst.msk [vmem:[#allocation2] sm:$0xff] %vm258_vm3, %v781_v58  ;;  %807 = vrot.lane.b32.xlu1 %v781_v58, %s1178_s12 }
 0x262   : > { %v1087_v8 = vpop.f32.mrf.mxu0 }
 0x264   : > { %v786_v9 = vpop.f32.mrf.mxu0 }
 0x265   : > { %796 = vst.msk [vmem:[#allocation2 + $0x8] sm:$0xff] %vm258_vm3, %v786_v9  ;;  %809 = vrot.lane.b32.xlu0 %v786_v9, %s1178_s12 }
 0x266   : > { %v1090_v10 = vpop.f32.mrf.mxu0 }
 0x268   : > { %v791_v2 = vpop.f32.mrf.mxu0 }
 0x269   : > { %798 = vst.msk [vmem:[#allocation2 + $0x10] sm:$0x1] %vm797_vm15, %v791_v2  ;;  %825 = vrot.lane.b32.xlu0 %v781_v58, %s1179_s13  ;;  %811 = vrot.lane.b32.xlu1 %v791_v2, %s1178_s12 }
 0x26a   : > { %v1093_v11 = vpop.f32.mrf.mxu0 }
 0x26c   : > { %v801_v12 = vld [vmem:[#allocation2 + $0x1] sm:$0xff] }
 0x26d   : > { %829 = vrot.lane.b32.xlu0 %v791_v2, %s1179_s13  ;;  %827 = vrot.lane.b32.xlu1 %v786_v9, %s1179_s13 }
 0x270   : > { %v802_v15 = vld [vmem:[#allocation2 + $0x9] sm:$0xff] }
 0x271   : > { %845 = vrot.lane.b32.xlu0 %v786_v9, %s1180_s14  ;;  %843 = vrot.lane.b32.xlu1 %v781_v58, %s1180_s14 }
 0x275   : > { %847 = vrot.lane.b32.xlu1 %v791_v2, %s1180_s14 }
 0x2d3   : > { %v808_v0 = vpop.permute.xlu1 %807 }
 0x2d4   : > { %v816_v13 = vadd.f32 %v808_v0, %v801_v12 }
 0x2d6   : > { %819 = vst.msk [vmem:[#allocation2 + $0x1] sm:$0xff] %vm258_vm3, %v816_v13 }
 0x2d7   : > { %v810_v14 = vpop.permute.xlu0 %809 }
 0x2d8   : > { %v817_v16 = vadd.f32 %v810_v14, %v802_v15 }
 0x2da   : > { %820 = vst.msk [vmem:[#allocation2 + $0x9] sm:$0xff] %vm258_vm3, %v817_v16 }
 0x2db   : > { %v826_v18 = vpop.permute.xlu0 %825  ;;  %v812_v19 = vpop.permute.xlu1 %811 }
 0x2dc   : > { %v818_v20 = vadd.f32 %v812_v19, %v803_v17 }
 0x2de   : > { %821 = vst.msk [vmem:[#allocation2 + $0x11] sm:$0x1] %vm797_vm15, %v818_v20 }
 0x2df   : > { %v830_v22 = vpop.permute.xlu0 %829  ;;  %v828_v23 = vpop.permute.xlu1 %827 }
 0x2e0   : > { %v836_v24 = vadd.f32 %v830_v22, %v824_v21 }
 0x2e1   : > { %v822_v25 = vld [vmem:[#allocation2 + $0x2] sm:$0xff] }
 0x2e2   : > { %v834_v26 = vadd.f32 %v826_v18, %v822_v25  ;;  %839 = vst.msk [vmem:[#allocation2 + $0x12] sm:$0x1] %vm797_vm15, %v836_v24 }
 0x2e3   : > { %v844_v27 = vpop.permute.xlu1 %843  ;;  %v846_v33 = vpop.permute.xlu0 %845 }
 0x2e4   : > { %837 = vst.msk [vmem:[#allocation2 + $0x2] sm:$0xff] %vm258_vm3, %v834_v26 }
 0x2e5   : > { %v823_v28 = vld [vmem:[#allocation2 + $0xa] sm:$0xff] }
 0x2e6   : > { %v835_v30 = vadd.f32 %v828_v23, %v823_v28 }
 0x2e7   : > { %v848_v31 = vpop.permute.xlu1 %847 }
 0x2e8   : > { %838 = vst.msk [vmem:[#allocation2 + $0xa] sm:$0xff] %vm258_vm3, %v835_v30  ;;  %v854_v32 = vadd.f32 %v848_v31, %v842_v29 }
 0x2ea   : > { %857 = vst.msk [vmem:[#allocation2 + $0x13] sm:$0x1] %vm797_vm15, %v854_v32 }
 0x2ef   : > { %v841_v34 = vld [vmem:[#allocation2 + $0xb] sm:$0xff]  ;;  %v840_v35 = vld [vmem:[#allocation2 + $0x3] sm:$0xff] }
 0x2f0   : > { %v853_v36 = vadd.f32 %v846_v33, %v841_v34  ;;  %v852_v37 = vadd.f32 %v844_v27, %v840_v35 }
 0x2f2   : > { %856 = vst.msk [vmem:[#allocation2 + $0xb] sm:$0xff] %vm258_vm3, %v853_v36  ;;  %855 = vst.msk [vmem:[#allocation2 + $0x3] sm:$0xff] %vm258_vm3, %v852_v37 }
 0x2f9   : > { %v858_v41 = vld [vmem:[#allocation2] sm:$0xff]  ;;  %v859_v42 = vld [vmem:[#allocation2 + $0x8] sm:$0xff]  ;;  %v860_v43 = vld [vmem:[#allocation2 + $0x10] sm:$0xf] }
 0x2fa   : > { %v864_v44 = vmul.f32 %v861_v38, %v858_v41  ;;  %v865_v45 = vmul.f32 %v862_v39, %v859_v42  ;;  %v866_v46 = vmul.f32 %v863_v40, %v860_v43 }
 0x2fc   : > { %867 = vst.msk [vmem:[%s240_s24] sm:$0xff] %vm258_vm3, %v864_v44  ;;  %868 = vst.msk [vmem:[%s240_s24 + $0x8] sm:$0xff] %vm258_vm3, %v865_v45 }
 0x2fd   : > { %870 = vst.msk [vmem:[%s240_s24 + $0x10] sm:$0xf] %vm869_vm0, %v866_v46 }
 0x2fe PF: > { %s17_s20 = sadd.s32 1, %s1170_s20  }
 0x2ff   : > { %p14_p1 = scmp.ge.s32.totalorder %s17_s20, 4  }
 0x301   :  { %16 = sbr.rel (!%p14_p1) target bundleno = 3 (0x3), region = 75 }
 0x306   :  { %892 = vsyncpa [#allocation5], 1 }
 0x307   :  { %894 = vsyncpa [#allocation5 + $0x1], 1 }

</bundles_post_ra>
